<compile_context>
chip_gen: v7x
topology: tpu7x:2x2x1
jax: 0.10.0
libtpu: 0.0.40
codegen_flags: <defaults>
</compile_context>

<pallas_src>
import jax
import jax.numpy as jnp
from jax.experimental import pallas as pl
from jax.experimental.pallas import tpu as pltpu

SELU_ALPHA = 1.6732632423543772
SELU_SCALE = 1.0507009873554804
BN_EPS = 1e-5
OUT_SUB = 8   # 2 real output channels padded to 8 sublanes (output is (8, B), batch on lanes)


def net_kernel(x_ref, w1t_ref, b1_ref, w3f_ref, bias_ref, o_ref, acc_ref):
    k = pl.program_id(1)

    # fc1 accumulation over the K-tiled contraction axis (f32 accumulator in VMEM scratch).
    @pl.when(k == 0)
    def _():
        acc_ref[...] = jnp.zeros_like(acc_ref)

    acc_ref[...] += jnp.dot(x_ref[...].astype(jnp.bfloat16), w1t_ref[...],
                            preferred_element_type=jnp.float32)

    # Epilogue only on the last K step: +b1 -> SELU -> folded fc3 -> transposed store.
    @pl.when(k == pl.num_programs(1) - 1)
    def _():
        h = acc_ref[...] + b1_ref[...]                        # (TB, D) f32
        # SELU in f32; exp routes to the EUP slot.
        # NOTE: exp(h)-1 kept instead of expm1 (not relied on in Mosaic lowering); error is
        # negligible vs the bf16 MXU rounding already accepted downstream.
        h = SELU_SCALE * jnp.where(h > 0.0, h, SELU_ALPHA * (jnp.exp(h) - 1.0))

        # BatchNorm1d (eval) folded into w3f / bias_ref; Dropout(p=0.05) is identity in eval.
        # TODO(synk): training-mode dropout mask and batch-stats BN are not implemented (eval-only).

        # fc3: contract last dims of (8, D) and (TB, D) -> (8, TB); batch lands on lanes so the
        # store is lane-dense and the HBM writeback is only 8 f32 per batch element.
        o_ref[...] = (jax.lax.dot_general(
            w3f_ref[...], h.astype(jnp.bfloat16),
            dimension_numbers=(((1,), (1,)), ((), ())),
            preferred_element_type=jnp.float32) + bias_ref[...])


def prep_params(params):
    """One-time parameter prep: BN folding, transposes, sublane padding, bf16 casts."""
    D = params["w1"].shape[0]
    scale = params["gamma"] * jax.lax.rsqrt(params["running_var"] + BN_EPS)   # (D,)
    offset = params["beta"] - params["running_mean"] * scale                  # (D,)

    w3t = params["w3"].T                                   # (D, 2)
    w3_folded = scale[:, None] * w3t                       # BN scale folded into fc3
    out_bias = offset @ w3t                                # (2,) BN offset folded into fc3

    # Pad the 2 outputs to 8 sublanes; output tensor is (8, B) with batch on lanes.
    w3_pad = jnp.zeros((OUT_SUB, D), jnp.float32).at[:2, :].set(w3_folded.T)
    bias_pad = jnp.zeros((OUT_SUB, 1), jnp.float32).at[:2, 0].set(out_bias)

    return {
        "w1t": params["w1"].T.astype(jnp.bfloat16),        # (D, D)  bf16 MXU input
        "b1": params["b1"].reshape(1, D).astype(jnp.float32),
        "w3f": w3_pad.astype(jnp.bfloat16),                # (8, D)  bf16 MXU input
        "out_bias": bias_pad,                              # (8, 1)  f32
    }


def _pick_tiles(B, D):
    # K (contraction) tile: largest 128-multiple that divides D, else the full D.
    TK = D
    for cand in (512, 256, 128):
        if D % cand == 0:
            TK = cand
            break

    # Batch tile: whole batch when small (block dims equal to full array dims are always legal);
    # otherwise a 256-multiple (whole MXU passes on v6e/v7x, lane-dense stores), capped so
    #   (a) the grid keeps >= 2 "parallel" steps for v7x's 2 TensorCores, and
    #   (b) the (TB, D) f32 fc1 accumulator stays within ~8 MiB of VMEM.
    if B <= 512:
        TB = B
    else:
        acc_cap = max(256, ((8 << 20) // (4 * D)) // 256 * 256)
        TB = 256
        for cand in (2048, 1024, 512, 256):
            if cand <= acc_cap and B >= 2 * cand:
                TB = cand
                break
    return TB, TK


def net_forward(x, p):
    B, D = x.shape
    TB, TK = _pick_tiles(B, D)
    nb = pl.cdiv(B, TB)
    nk = D // TK   # TK divides D by construction

    # Scoped-VMEM budget: double-buffered tiles + weights + accumulator, with headroom
    # (v5e default scoped limit is only 16 MiB; v6e/v7x 32 MiB).
    vmem_est = (2 * TB * TK * x.dtype.itemsize   # x tiles
                + 2 * TK * D * 2                 # W1^T tiles (bf16)
                + 2 * D * 4                      # b1
                + 2 * OUT_SUB * D * 2            # folded W3 (bf16)
                + 2 * OUT_SUB * 4                # folded bias
                + 2 * OUT_SUB * TB * 4           # out tiles
                + TB * D * 4)                    # fc1 f32 accumulator scratch
    vmem_limit = int(min(128 << 20, max(32 << 20, vmem_est * 3 // 2 + (2 << 20))))

    cost = pl.CostEstimate(
        flops=2 * B * D * (D + OUT_SUB),
        transcendentals=B * D,
        bytes_accessed=(B * D * x.dtype.itemsize        # x read
                        + nb * D * D * 2                # W1 (re-streamed per batch tile)
                        + OUT_SUB * D * 2 + D * 4       # W3 + b1
                        + OUT_SUB * B * 4),             # transposed output write
    )

    out = pl.pallas_call(
        net_kernel,
        out_shape=jax.ShapeDtypeStruct((OUT_SUB, B), jnp.float32),
        grid_spec=pltpu.PrefetchScalarGridSpec(
            num_scalar_prefetch=0,
            grid=(nb, nk),                                        # reduction axis last
            in_specs=[
                pl.BlockSpec((TB, TK), lambda i, k: (i, k)),      # x: streams, native dtype
                pl.BlockSpec((TK, D), lambda i, k: (k, 0)),       # W1^T: K-tiled
                pl.BlockSpec((1, D), lambda i, k: (0, 0)),        # b1 (stationary)
                pl.BlockSpec((OUT_SUB, D), lambda i, k: (0, 0)),  # folded W3 (stationary)
                pl.BlockSpec((OUT_SUB, 1), lambda i, k: (0, 0)),  # folded out bias (stationary)
            ],
            out_specs=pl.BlockSpec((OUT_SUB, TB), lambda i, k: (0, i)),
            scratch_shapes=[pltpu.VMEM((TB, D), jnp.float32)],    # fc1 accumulator
        ),
        compiler_params=pltpu.CompilerParams(
            dimension_semantics=("parallel", "arbitrary"),        # batch across 2 TCs on v7x
            vmem_limit_bytes=vmem_limit),
        cost_estimate=cost,
    )(x, p["w1t"], p["b1"], p["w3f"], p["out_bias"])

    # Take the 2 real sublanes, put batch back on the leading axis; match torch's x.squeeze().
    return jnp.squeeze(out[:2, :B].T)


def init_params(key, input_dim):
    k1, k2, k3, k4, k5 = jax.random.split(key, 5)
    bound1 = 1.0 / jnp.sqrt(input_dim)
    return {
        # nn.Linear(input_dim, input_dim): weight (D, D), bias (D,)
        "w1": jax.random.uniform(k1, (input_dim, input_dim),
                                 jnp.float32, -bound1, bound1),
        "b1": jax.random.uniform(k2, (input_dim,), jnp.float32, -bound1, bound1),
        # nn.BatchNorm1d(input_dim): affine + running stats
        "gamma": jnp.ones((input_dim,), jnp.float32)
                 + 0.1 * jax.random.normal(k3, (input_dim,), jnp.float32),
        "beta": 0.1 * jax.random.normal(k4, (input_dim,), jnp.float32),
        "running_mean": jnp.zeros((input_dim,), jnp.float32),
        "running_var": jnp.ones((input_dim,), jnp.float32),
        # nn.Linear(input_dim, 2, bias=False): weight (2, D)
        "w3": jax.random.uniform(k5, (2, input_dim),
                                 jnp.float32, -bound1, bound1),
    }


if __name__ == "__main__":
    key = jax.random.PRNGKey(0)
    kx, kp = jax.random.split(key)

    batch, input_dim = 8, 32
    x = jax.random.normal(kx, (batch, input_dim), jnp.float32)
    params = init_params(kp, input_dim)
    prepped = prep_params(params)

    out = net_forward(x, prepped)
    jax.block_until_ready(out)

    # Pure-JAX f32 reference (kernel uses bf16 MXU inputs -> relaxed tolerance).
    h = x @ params["w1"].T + params["b1"]
    h = SELU_SCALE * jnp.where(h > 0, h, SELU_ALPHA * (jnp.exp(h) - 1.0))
    h = ((h - params["running_mean"])
         / jnp.sqrt(params["running_var"] + BN_EPS)) * params["gamma"] + params["beta"]
    ref = jnp.squeeze(h @ params["w3"].T)

    assert out.shape == (batch, 2), out.shape
    assert jnp.allclose(out, ref, atol=5e-2, rtol=5e-2), float(jnp.max(jnp.abs(out - ref)))

    print("KERNEL_OK")
</pallas_src>

<mosaic_0001>
module attributes {stable_mosaic.version = 11 : i64} {
  func.func @net_kernel(%arg0: i32, %arg1: i32, %arg2: memref<8x32xf32, #tpu.memory_space<vmem>>, %arg3: memref<32x32xbf16, #tpu.memory_space<vmem>>, %arg4: memref<1x32xf32, #tpu.memory_space<vmem>>, %arg5: memref<8x32xbf16, #tpu.memory_space<vmem>>, %arg6: memref<8x1xf32, #tpu.memory_space<vmem>>, %arg7: memref<8x8xf32, #tpu.memory_space<vmem>>, %arg8: memref<8x32xf32, #tpu.memory_space<vmem>>) attributes {dimension_semantics = [#tpu.dimension_semantics<parallel>, #tpu.dimension_semantics<arbitrary>], iteration_bounds = array<i64: 1, 1>, scalar_prefetch = 0 : i64, scratch_operands = 1 : i64, tpu.core_type = #tpu.core_type<tc>, window_params = [{transform_indices = @transform_0, window_bounds = array<i64: 8, 32>}, {transform_indices = @transform_1, window_bounds = array<i64: 32, 32>}, {pipeline_mode = #tpu.pipeline_mode<synchronous>, transform_indices = @transform_2, window_bounds = array<i64: 1, 32>}, {pipeline_mode = #tpu.pipeline_mode<synchronous>, transform_indices = @transform_3, window_bounds = array<i64: 8, 32>}, {pipeline_mode = #tpu.pipeline_mode<synchronous>, transform_indices = @transform_4, window_bounds = array<i64: 8, 1>}, {transform_indices = @transform_5, window_bounds = array<i64: 8, 8>}]} {
    %c0_i32 = arith.constant 0 : i32
    %0 = arith.cmpi eq, %arg1, %c0_i32 : i32
    %1 = arith.extui %0 : i1 to i32
    %c0_i32_0 = arith.constant 0 : i32
    %2 = arith.cmpi ne, %1, %c0_i32_0 : i32
    scf.if %2 {
      %cst_10 = arith.constant 0.000000e+00 : f32
      %13 = vector.broadcast %cst_10 : f32 to vector<8x32xf32>
      %c0_11 = arith.constant 0 : index
      %c0_12 = arith.constant 0 : index
      %14 = vector.load %arg8[%c0_11, %c0_12] : memref<8x32xf32, #tpu.memory_space<vmem>>, vector<8x32xf32>
      tpu.vector_store %arg8[%c0_11, %c0_12], %13 {strides = array<i32>} : memref<8x32xf32, #tpu.memory_space<vmem>>, vector<8x32xf32>,
    } else {
    }
    %c0 = arith.constant 0 : index
    %c0_1 = arith.constant 0 : index
    %3 = vector.load %arg8[%c0, %c0_1] : memref<8x32xf32, #tpu.memory_space<vmem>>, vector<8x32xf32>
    %c0_2 = arith.constant 0 : index
    %c0_3 = arith.constant 0 : index
    %4 = vector.load %arg2[%c0_2, %c0_3] : memref<8x32xf32, #tpu.memory_space<vmem>>, vector<8x32xf32>
    %5 = arith.truncf %4 : vector<8x32xf32> to vector<8x32xbf16>
    %c0_4 = arith.constant 0 : index
    %c0_5 = arith.constant 0 : index
    %6 = vector.load %arg3[%c0_4, %c0_5] : memref<32x32xbf16, #tpu.memory_space<vmem>>, vector<32x32xbf16>
    %cst = arith.constant dense<0.000000e+00> : vector<8x32xf32>
    %7 = tpu.matmul %5, %6, %cst {dimension_numbers = #tpu.dot_dimension_numbers<[1], [0], [0], [1], [0, 0, 1, 1], [], []>} : vector<8x32xbf16>, vector<32x32xbf16>, vector<8x32xf32> -> vector<8x32xf32>
    %8 = arith.addf %3, %7 : vector<8x32xf32>
    %c0_6 = arith.constant 0 : index
    %c0_7 = arith.constant 0 : index
    %9 = vector.load %arg8[%c0_6, %c0_7] : memref<8x32xf32, #tpu.memory_space<vmem>>, vector<8x32xf32>
    tpu.vector_store %arg8[%c0_6, %c0_7], %8 {strides = array<i32>} : memref<8x32xf32, #tpu.memory_space<vmem>>, vector<8x32xf32>,
    %c0_i32_8 = arith.constant 0 : i32
    %10 = arith.cmpi eq, %arg1, %c0_i32_8 : i32
    %11 = arith.extui %10 : i1 to i32
    %c0_i32_9 = arith.constant 0 : i32
    %12 = arith.cmpi ne, %11, %c0_i32_9 : i32
    scf.if %12 {
      %c0_10 = arith.constant 0 : index
      %c0_11 = arith.constant 0 : index
      %13 = vector.load %arg8[%c0_10, %c0_11] : memref<8x32xf32, #tpu.memory_space<vmem>>, vector<8x32xf32>
      %c0_12 = arith.constant 0 : index
      %c0_13 = arith.constant 0 : index
      %14 = vector.load %arg4[%c0_12, %c0_13] : memref<1x32xf32, #tpu.memory_space<vmem>>, vector<1x32xf32>
      %15 = vector.broadcast %14 : vector<1x32xf32> to vector<8x32xf32>
      %16 = arith.addf %13, %15 : vector<8x32xf32>
      %cst_14 = arith.constant 0.000000e+00 : f32
      %17 = vector.broadcast %cst_14 : f32 to vector<8x32xf32>
      %18 = arith.cmpf ogt, %16, %17 : vector<8x32xf32>
      %19 = math.exp %16 : vector<8x32xf32>
      %cst_15 = arith.constant 1.000000e+00 : f32
      %20 = vector.broadcast %cst_15 : f32 to vector<8x32xf32>
      %21 = arith.subf %19, %20 : vector<8x32xf32>
      %cst_16 = arith.constant 1.67326319 : f32
      %22 = vector.broadcast %cst_16 : f32 to vector<8x32xf32>
      %23 = arith.mulf %22, %21 : vector<8x32xf32>
      %24 = arith.select %18, %16, %23 : vector<8x32xi1>, vector<8x32xf32>
      %cst_17 = arith.constant 1.05070102 : f32
      %25 = vector.broadcast %cst_17 : f32 to vector<8x32xf32>
      %26 = arith.mulf %25, %24 : vector<8x32xf32>
      %c0_18 = arith.constant 0 : index
      %c0_19 = arith.constant 0 : index
      %27 = vector.load %arg5[%c0_18, %c0_19] : memref<8x32xbf16, #tpu.memory_space<vmem>>, vector<8x32xbf16>
      %28 = arith.truncf %26 : vector<8x32xf32> to vector<8x32xbf16>
      %cst_20 = arith.constant dense<0.000000e+00> : vector<8x8xf32>
      %29 = tpu.matmul %27, %28, %cst_20 {dimension_numbers = #tpu.dot_dimension_numbers<[1], [1], [0], [0], [0, 0, 1, 0], [], []>} : vector<8x32xbf16>, vector<8x32xbf16>, vector<8x8xf32> -> vector<8x8xf32>
      %c0_21 = arith.constant 0 : index
      %c0_22 = arith.constant 0 : index
      %30 = vector.load %arg6[%c0_21, %c0_22] : memref<8x1xf32, #tpu.memory_space<vmem>>, vector<8x1xf32>
      %31 = vector.broadcast %30 : vector<8x1xf32> to vector<8x8xf32>
      %32 = arith.addf %29, %31 : vector<8x8xf32>
      %c0_23 = arith.constant 0 : index
      %c0_24 = arith.constant 0 : index
      %33 = vector.load %arg7[%c0_23, %c0_24] : memref<8x8xf32, #tpu.memory_space<vmem>>, vector<8x8xf32>
      tpu.vector_store %arg7[%c0_23, %c0_24], %32 {strides = array<i32>} : memref<8x8xf32, #tpu.memory_space<vmem>>, vector<8x8xf32>,
    } else {
    }
    return
  }
  func.func @transform_0(%arg0: i32, %arg1: i32) -> (i32, i32) {
    %c0_i32 = arith.constant 0 : i32
    return %arg0, %arg1 : i32, i32
  }
  func.func @transform_1(%arg0: i32, %arg1: i32) -> (i32, i32) {
    %c0_i32 = arith.constant 0 : i32
    %c0_i32_0 = arith.constant 0 : i32
    return %arg1, %c0_i32 : i32, i32
  }
  func.func @transform_2(%arg0: i32, %arg1: i32) -> (i32, i32) {
    %c0_i32 = arith.constant 0 : i32
    %c0_i32_0 = arith.constant 0 : i32
    %c0_i32_1 = arith.constant 0 : i32
    return %c0_i32, %c0_i32_0 : i32, i32
  }
  func.func @transform_3(%arg0: i32, %arg1: i32) -> (i32, i32) {
    %c0_i32 = arith.constant 0 : i32
    %c0_i32_0 = arith.constant 0 : i32
    %c0_i32_1 = arith.constant 0 : i32
    return %c0_i32, %c0_i32_0 : i32, i32
  }
  func.func @transform_4(%arg0: i32, %arg1: i32) -> (i32, i32) {
    %c0_i32 = arith.constant 0 : i32
    %c0_i32_0 = arith.constant 0 : i32
    %c0_i32_1 = arith.constant 0 : i32
    return %c0_i32, %c0_i32_0 : i32, i32
  }
  func.func @transform_5(%arg0: i32, %arg1: i32) -> (i32, i32) {
    %c0_i32 = arith.constant 0 : i32
    %c0_i32_0 = arith.constant 0 : i32
    return %c0_i32, %arg0 : i32, i32
  }
}

</mosaic_0001>

<bundles_post_ra>
// kernel: tpu_custom_call.1
= control target key start
LH: loop header
LB: loop body
LE: loop exit
PB: predicated region body
PF: predicated region fallthrough
CT: control target
= control target key end

     0   :  { %10 = vsyncpa [#allocation4], 0  ;;  %s360_s0 = inlined_call_operand.vmem [shape: f32[8,32], index: 0, kind: input, shape index: {}]   ;;  %s361_s1 = inlined_call_operand.hbm [shape: bf16[32,32], index: 1, kind: input, shape index: {}]   ;;  %s362_s2 = inlined_call_operand.vmem [shape: f32[1,32], index: 2, kind: input, shape index: {}]   ;;  %s363_s3 = inlined_call_operand.vmem [shape: bf16[8,32], index: 3, kind: input, shape index: {}]   ;;  %s364_s4 = inlined_call_operand.vmem [shape: f32[8,1], index: 4, kind: input, shape index: {}]   ;;  %s365_s5 = inlined_call_operand.hbm [shape: f32[8,8], index: 5, kind: output, shape index: {}]  }
   0x1   :  { %11 = vsyncpa [#allocation5], 0  ;;  %s282_s18 = smov [#allocation3]   ;;  %s234_s22 = scalar_lea.hbm %s361_s1, 256 }
   0x2   :  { %s19_s19 = sshll.u32 %s282_s18, 4  ;;  %p235_p0 = scmp.ne.s32.totalorder %s361_s1, %s234_s22  ;;  %s20_s19 = int_to_ptr.vmem [resolvable:$true] %s19_s19 }
   0x3   :  { %p238_p1 = scmp.lt.u32.totalorder %s234_s22, %s361_s1 }
   0x5   :  { %p240_p2 = pnand %p238_p1, %p235_p0 }
   0x7   :  { %243 = shalt.err (!%p240_p2)
}
   0x8   :  { %s244_s27 = scalar_lea.vmem %s20_s19, 256  ;;  %p249_p4 = scmp.lt.s32.totalorder %s20_s19, %s20_s19 }
   0x9   :  { %p245_p3 = scmp.ne.s32.totalorder %s20_s19, %s244_s27  ;;  %p250_p5 = scmp.lt.s32.totalorder %s244_s27, %s244_s27 }
   0xb   :  { %p251_p6 = por %p250_p5, %p249_p4 }
   0xd   :  { %p252_p7 = pnand %p251_p6, %p245_p3 }
   0xf   :  { %255 = shalt.err (!%p252_p7)
}
  0x10   :  { %s283_s28 = smov 64   ;;  %s284_s29 = smov 4  }
  0x11   :  { %25 = dma.hbm_to_vmem [thread:$0]  %s361_s1, 256, %s20_s19, [#allocation4], %s283_s28, %s283_s28, %s284_s29  }
  0x12   :  { %278 = dma.done.wait [#allocation4], 256  }
  0x13   :  { %279 = vsyncadd [#allocation4], 4294967040  ;;  %vm40_vm0 = vcmask 261120   ;;  %v285_v0 = vmov 0.0   ;;  %vm286_vm1 = vmmov 0   ;;  %v230_v1 = vld [vmem:[#allocation3] sm:$0xff]  }
  0x14   :  { %208 = vmatprep.subr.bf16.mxu0 %v285_v0  ;;  %212 = vmatprep.mubr.msk.bf16.mxu0 %vm286_vm1, %v285_v0  ;;  %41 = vst.msk [vmem:[#allocation2] sm:$0xff] %vm40_vm0, %v285_v0  ;;  %v231_v2 = vld [vmem:[#allocation3 + $0x8] sm:$0xff]   ;;  %v43_v3 = vld [vmem:[%s360_s0] sm:$0xff]  ;;  %v287_v6 = vmov 0   ;;  %vm180_vm3 = vcmask 64512  }
  0x15   :  { %216 = vmatprep.subr.bf16.mxu1 %v285_v0  ;;  %218 = vmatprep.mubr.msk.bf16.mxu1 %vm286_vm1, %v285_v0  ;;  %v44_v4 = vpack.c.bf16 %v43_v3, %v43_v3  ;;  %v128_v5 = vld [vmem:[%s364_s4] sm:$0xff] }
  0x16   :  { %209 = vmatpush3.bf16.msra.mxu0 %v230_v1  ;;  %229 = vset.pattern.permute.xlu0 %v287_v6  ;;  %v200_v13 = vld [vmem:[%s362_s2] ss:$0 sm:$0xff]  ;;  %s288_s2 = smov [#allocation6]  }
  0x17   :  { %210 = vmatprep.subr.bf16.mxu0 %v285_v0  ;;  %131 = vperm.xlu0 %229, %v128_v5   ;;  %v126_v24 = vld [vmem:[%s363_s3] sm:$0xf]  ;;  %s188_s12 = sshll.u32 %s288_s2, 4  ;;  %s189_s12 = int_to_ptr.vmem [resolvable:$true] %s188_s12 }
  0x18   :  { %s256_s13 = scalar_lea.vmem %s189_s12, 128  ;;  %p261_p9 = scmp.lt.s32.totalorder %s189_s12, %s189_s12 }
  0x19   :  { %p257_p8 = scmp.ne.s32.totalorder %s189_s12, %s256_s13  ;;  %p262_p10 = scmp.lt.s32.totalorder %s256_s13, %s256_s13 }
  0x1a   :  { %211 = vmatpush3.bf16.msra.mxu0 %v231_v2 }
  0x1b   :  { %v42_v7 = vld [vmem:[#allocation2] sm:$0xff]  ;;  %p263_p11 = por %p262_p10, %p261_p9 }
  0x1d   :  { %213 = vmatmul.mubr.msk.bf16.vlgmr.msra.gmra.mrb[0].mxu0 %vm40_vm0, %v44_v4  ;;  %p264_p12 = pnand %p263_p11, %p257_p8 }
  0x96   :  { %v132_v25 = vpop.permute.xlu0 %131 }
  0xf0   :  { %v99_v8 = vpop.f32.mrb[0].mxu0 }
  0xf1   :  { %v105_v9 = vadd.f32 %v99_v8, %v42_v7  ;;  %v214_v10 = vpop.f32.mrb[1].mxu0 }
  0xf2   :  { %v102_v11 = vpop.f32.mrb[2].mxu0 }
  0xf3   :  { %106 = vst.msk [vmem:[#allocation2] sm:$0xff] %vm40_vm0, %v105_v9  ;;  %v215_v12 = vpop.f32.mrb[3].mxu0 }
  0xfa   :  { %v110_v14 = vld [vmem:[#allocation2] sm:$0xff] }
  0xfb   :  { %v118_v15 = vadd.f32 %v200_v13, %v110_v14 }
  0xfd   :  { %v120_v16 = vmul.f32 1.442695, %v118_v15  ;;  %vm119_vm2 = vcmp.gt.f32.partialorder %v118_v15, 0.0 }
  0xff   :  { %232 = vpow2.f32 %v120_v16 }
 0x109   :  { %v233_v17 = vpop.eup %232 }
 0x10a   :  { %v201_v18 = vadd.f32 -1.0, %v233_v17 }
 0x10c   :  { %v123_v19 = vmul.f32 1.6732632, %v201_v18 }
 0x10e   :  { %v124_v20 = vsel %vm119_vm2, %v118_v15, %v123_v19 }
 0x10f   :  { %v125_v21 = vmul.f32 1.050701, %v124_v20 }
 0x111   :  { %v127_v22 = vpack.c.bf16 %v125_v21, %v125_v21 }
 0x113   :  { %v138_v23 = vsel %vm40_vm0, %v127_v22, 0 }
 0x114   :  { %217 = vmatpush3.bf16.xpose.msra.mxu1 %v138_v23 }
 0x11b   :  { %219 = vmatmul.mubr.msk.bf16.vlgmr.msra.gmra.mrb[0].mxu1 %vm40_vm0, %v126_v24 }
 0x1ee   :  { %v174_v26 = vpop.f32.mrb[0].mxu1 }
 0x1ef   :  { %v175_v27 = vadd.f32 %v174_v26, %v132_v25  ;;  %v220_v28 = vpop.f32.mrb[1].mxu1 }
 0x1f0   :  { %v177_v29 = vpop.f32.mrb[2].mxu1 }
 0x1f1   :  { %v221_v30 = vpop.f32.mrb[3].mxu1  ;;  %181 = vst.msk [vmem:[#allocation6] sm:$0xff] %vm180_vm3, %v175_v27 }
 0x1f2   :  { %267 = shalt.err (!%p264_p12)
}
 0x1f3   :  { %s268_s15 = scalar_lea.hbm %s365_s5, 128 }
 0x1f4   :  { %p269_p13 = scmp.ne.s32.totalorder %s365_s5, %s268_s15  ;;  %p272_p0 = scmp.lt.u32.totalorder %s268_s15, %s365_s5 }
 0x1f6   :  { %p274_p1 = pnand %p272_p0, %p269_p13 }
 0x1f8   :  { %277 = shalt.err (!%p274_p1)
}
 0x1f9   :  { %191 = dma.vmem_to_hbm [thread:$0]  %s189_s12, 128, %s365_s5, [#allocation5]  }
 0x1fa   :  { %280 = dma.done.wait [#allocation5], 128  }
 0x1fb   :  { %281 = vsyncadd [#allocation5], 4294967168 }
 0x1fc   :  { %195 = vsyncpa [#allocation4], 1 }
 0x1fd   :  { %196 = vsyncpa [#allocation5], 1 }

</bundles_post_ra>
